<compile_context>
chip_gen: v6e
topology: v6e:2x2x1
jax: 0.10.0
libtpu: 0.0.40
codegen_flags: <defaults>
</compile_context>

<pallas_src>
import functools
import math

import jax
import jax.numpy as jnp
from jax.experimental import pallas as pl
from jax.experimental.pallas import tpu as pltpu

LANE = 128        # lane width (last dim alignment)
SUBLANE = 8       # sublane width (second-to-last dim alignment)
MAX_BLOCK_B = 256 # max batch rows per grid step


def _round_up(x, m):
    return ((x + m - 1) // m) * m


# ---------------------------------------------------------------------------
# Fused kernel: the whole BNN forward for one batch tile.
# ---------------------------------------------------------------------------
def bnn_fused_kernel(x_ref, w_mu_ref, w_s2_ref, bias_ref, noise_ref, o_ref,
                     *, n_layers):
    """Per layer l (statically unrolled):
         mu  = h @ mu_w[l]^T + bias[l]
         var = (h*h) @ s2_w[l]^T + 1e-8        (s2_w precomputed = exp(clip(.)))
         h   = mu + sqrt(var) * noise[l]       (+ softplus except last layer)
    """
    h = x_ref[...]                                            # (tb, F) f32
    for l in range(n_layers):                                 # static unroll
        mu = jnp.dot(h, w_mu_ref[l],
                     preferred_element_type=jnp.float32) + bias_ref[l]
        var = jnp.dot(h * h, w_s2_ref[l],
                      preferred_element_type=jnp.float32) + 1e-8
        out = mu + jnp.sqrt(var) * noise_ref[l]
        if l < n_layers - 1:
            out = jax.nn.softplus(out)
        h = out
    o_ref[...] = h.astype(o_ref.dtype)


# ---------------------------------------------------------------------------
# Wrapper: pad/pack params, generate noise once, single pallas_call.
# ---------------------------------------------------------------------------
def bnn_forward(params, x, noise_key):
    """Returns (out, noise_slab).  out has shape (B, n_out_last)."""
    B, n_in = x.shape
    L = len(params)
    layer_outs = [p["mu_w"].shape[0] for p in params]
    F = _round_up(max([n_in] + layer_outs), LANE)             # uniform slab width

    # Pack + zero-pad weights (transposed so the kernel computes h @ W).
    w_mu = jnp.zeros((L, F, F), jnp.float32)
    w_s2 = jnp.zeros((L, F, F), jnp.float32)
    bias = jnp.zeros((L, 1, F), jnp.float32)
    for l, p in enumerate(params):
        n_o, n_i = p["mu_w"].shape
        w_mu = w_mu.at[l, :n_i, :n_o].set(p["mu_w"].T)
        s2 = jnp.exp(jnp.clip(p["logsig2_w"], -11.0, 11.0))   # hoisted exp
        w_s2 = w_s2.at[l, :n_i, :n_o].set(s2.T)
        bias = bias.at[l, 0, :n_o].set(p["bias"])

    # Batch padding / tiling.
    if B <= MAX_BLOCK_B:
        Bp = _round_up(B, SUBLANE)
        tile_b = Bp
    else:
        Bp = _round_up(B, MAX_BLOCK_B)
        tile_b = MAX_BLOCK_B
    x_pad = jnp.zeros((Bp, F), jnp.float32).at[:B, :n_in].set(x)

    # One RNG call for all layers' reparameterization noise.
    noise = jax.random.normal(noise_key, (L, Bp, F), jnp.float32)

    grid = (Bp // tile_b,)
    kernel = functools.partial(bnn_fused_kernel, n_layers=L)
    out_pad = pl.pallas_call(
        kernel,
        out_shape=jax.ShapeDtypeStruct((Bp, F), jnp.float32),
        grid=grid,
        in_specs=[
            pl.BlockSpec((tile_b, F), lambda i: (i, 0)),        # x tile
            pl.BlockSpec((L, F, F), lambda i: (0, 0, 0)),       # mu_w^T (resident)
            pl.BlockSpec((L, F, F), lambda i: (0, 0, 0)),       # s2_w^T (resident)
            pl.BlockSpec((L, 1, F), lambda i: (0, 0, 0)),       # bias   (resident)
            pl.BlockSpec((L, tile_b, F), lambda i: (0, i, 0)),  # noise tile
        ],
        out_specs=pl.BlockSpec((tile_b, F), lambda i: (i, 0)),
        compiler_params=pltpu.CompilerParams(
            dimension_semantics=("parallel",)),
    )(x_pad, w_mu, w_s2, bias, noise)

    return out_pad[:B, :layer_outs[-1]], noise


# ---------------------------------------------------------------------------
# Pure-JAX reference (same noise) for correctness checking.
# ---------------------------------------------------------------------------
def bnn_reference(params, x, noise):
    h = x
    L = len(params)
    for l, p in enumerate(params):
        n_o = p["mu_w"].shape[0]
        mu = h @ p["mu_w"].T + p["bias"]
        s2 = jnp.exp(jnp.clip(p["logsig2_w"], -11.0, 11.0))
        var = (h * h) @ s2.T + 1e-8
        out = mu + jnp.sqrt(var) * noise[l, :h.shape[0], :n_o]
        h = jax.nn.softplus(out) if l < L - 1 else out
    return h


# ---------------------------------------------------------------------------
# Parameter init matching ProbLinear.reset_parameters().
# ---------------------------------------------------------------------------
def init_prob_linear(key, n_in, n_out):
    k_mu, k_ls = jax.random.split(key)
    stdv = 1.0 / math.sqrt(n_in)
    mu_w = stdv * jax.random.normal(k_mu, (n_out, n_in), jnp.float32)
    logsig2_w = -9.0 + 0.001 * jax.random.normal(k_ls, (n_out, n_in), jnp.float32)
    bias = jnp.zeros((n_out,), jnp.float32)
    return dict(mu_w=mu_w, logsig2_w=logsig2_w, bias=bias)


def init_bnn(key, n_in, n_out, n_hidden=100):
    keys = jax.random.split(key, 4)
    dims = [(n_in, n_hidden), (n_hidden, n_hidden),
            (n_hidden, n_hidden), (n_hidden, n_out)]
    return [init_prob_linear(k, di, do) for k, (di, do) in zip(keys, dims)]


if __name__ == "__main__":
    key = jax.random.PRNGKey(0)
    k_param, k_input, k_noise = jax.random.split(key, 3)

    # Small shapes consistent with the module: batch=4, n_in=16, hidden=32, out=8.
    B, N_IN, N_HIDDEN, N_OUT = 4, 16, 32, 8

    params = init_bnn(k_param, N_IN, N_OUT, n_hidden=N_HIDDEN)
    x = jax.random.normal(k_input, (B, N_IN), jnp.float32)

    fwd = jax.jit(bnn_forward)
    out, noise = fwd(params, x, k_noise)
    out = jax.block_until_ready(out)
    assert out.shape == (B, N_OUT) and out.dtype == jnp.float32
    assert bool(jnp.all(jnp.isfinite(out)))

    ref = bnn_reference(params, x, noise)
    assert bool(jnp.allclose(out, ref, rtol=5e-2, atol=5e-2)), "mismatch vs reference"

    print("KERNEL_OK")
</pallas_src>

<mosaic_0001>
module attributes {stable_mosaic.version = 11 : i64} {
  func.func @bnn_fused_kernel(%arg0: i32, %arg1: memref<8x128xf32, #tpu.memory_space<vmem>>, %arg2: memref<4x128x128xf32, #tpu.memory_space<vmem>>, %arg3: memref<4x128x128xf32, #tpu.memory_space<vmem>>, %arg4: memref<4x1x128xf32, #tpu.memory_space<vmem>>, %arg5: memref<4x8x128xf32, #tpu.memory_space<vmem>>, %arg6: memref<8x128xf32, #tpu.memory_space<vmem>>) attributes {dimension_semantics = [#tpu.dimension_semantics<parallel>], iteration_bounds = array<i64: 1>, scalar_prefetch = 0 : i64, scratch_operands = 0 : i64, tpu.core_type = #tpu.core_type<tc>, window_params = [{transform_indices = @transform_0, window_bounds = array<i64: 8, 128>}, {pipeline_mode = #tpu.pipeline_mode<synchronous>, transform_indices = @transform_1, window_bounds = array<i64: 4, 128, 128>}, {pipeline_mode = #tpu.pipeline_mode<synchronous>, transform_indices = @transform_2, window_bounds = array<i64: 4, 128, 128>}, {pipeline_mode = #tpu.pipeline_mode<synchronous>, transform_indices = @transform_3, window_bounds = array<i64: 4, 1, 128>}, {transform_indices = @transform_4, window_bounds = array<i64: 4, 8, 128>}, {transform_indices = @transform_5, window_bounds = array<i64: 8, 128>}]} {
    %c0 = arith.constant 0 : index
    %c0_0 = arith.constant 0 : index
    %0 = vector.load %arg1[%c0, %c0_0] : memref<8x128xf32, #tpu.memory_space<vmem>>, vector<8x128xf32>
    %c0_1 = arith.constant 0 : index
    %c0_2 = arith.constant 0 : index
    %c0_3 = arith.constant 0 : index
    %1 = vector.load %arg2[%c0_1, %c0_2, %c0_3] : memref<4x128x128xf32, #tpu.memory_space<vmem>>, vector<1x128x128xf32>
    %2 = vector.shape_cast %1 : vector<1x128x128xf32> to vector<128x128xf32>
    %cst = arith.constant dense<0.000000e+00> : vector<8x128xf32>
    %3 = tpu.matmul %0, %2, %cst {dimension_numbers = #tpu.dot_dimension_numbers<[1], [0], [0], [1], [0, 0, 1, 1], [], []>} : vector<8x128xf32>, vector<128x128xf32>, vector<8x128xf32> -> vector<8x128xf32>
    %c0_4 = arith.constant 0 : index
    %c0_5 = arith.constant 0 : index
    %c0_6 = arith.constant 0 : index
    %4 = vector.load %arg4[%c0_4, %c0_5, %c0_6] : memref<4x1x128xf32, #tpu.memory_space<vmem>>, vector<1x1x128xf32>
    %5 = vector.shape_cast %4 : vector<1x1x128xf32> to vector<1x128xf32>
    %6 = vector.broadcast %5 : vector<1x128xf32> to vector<8x128xf32>
    %7 = arith.addf %3, %6 : vector<8x128xf32>
    %8 = arith.mulf %0, %0 : vector<8x128xf32>
    %c0_7 = arith.constant 0 : index
    %c0_8 = arith.constant 0 : index
    %c0_9 = arith.constant 0 : index
    %9 = vector.load %arg3[%c0_7, %c0_8, %c0_9] : memref<4x128x128xf32, #tpu.memory_space<vmem>>, vector<1x128x128xf32>
    %10 = vector.shape_cast %9 : vector<1x128x128xf32> to vector<128x128xf32>
    %cst_10 = arith.constant dense<0.000000e+00> : vector<8x128xf32>
    %11 = tpu.matmul %8, %10, %cst_10 {dimension_numbers = #tpu.dot_dimension_numbers<[1], [0], [0], [1], [0, 0, 1, 1], [], []>} : vector<8x128xf32>, vector<128x128xf32>, vector<8x128xf32> -> vector<8x128xf32>
    %cst_11 = arith.constant 9.99999993E-9 : f32
    %12 = vector.broadcast %cst_11 : f32 to vector<8x128xf32>
    %13 = arith.addf %11, %12 : vector<8x128xf32>
    %14 = math.sqrt %13 : vector<8x128xf32>
    %c0_12 = arith.constant 0 : index
    %c0_13 = arith.constant 0 : index
    %c0_14 = arith.constant 0 : index
    %15 = vector.load %arg5[%c0_12, %c0_13, %c0_14] : memref<4x8x128xf32, #tpu.memory_space<vmem>>, vector<1x8x128xf32>
    %16 = vector.shape_cast %15 : vector<1x8x128xf32> to vector<8x128xf32>
    %17 = arith.mulf %14, %16 : vector<8x128xf32>
    %18 = arith.addf %7, %17 : vector<8x128xf32>
    %cst_15 = arith.constant 0.000000e+00 : f32
    %19 = vector.broadcast %cst_15 : f32 to vector<8x128xf32>
    %20 = arith.maximumf %18, %19 : vector<8x128xf32>
    %21 = vector.broadcast %cst_15 : f32 to vector<8x128xf32>
    %22 = arith.subf %18, %21 : vector<8x128xf32>
    %23 = arith.cmpf one, %22, %22 : vector<8x128xf32>
    %24 = vector.broadcast %cst_15 : f32 to vector<8x128xf32>
    %25 = arith.addf %18, %24 : vector<8x128xf32>
    %26 = math.absf %22 : vector<8x128xf32>
    %cst_16 = arith.constant 0.000000e+00 : f32
    %27 = vector.broadcast %cst_16 : f32 to vector<8x128xf32>
    %28 = arith.subf %27, %26 : vector<8x128xf32>
    %29 = math.exp %28 : vector<8x128xf32>
    %30 = math.log1p %29 : vector<8x128xf32>
    %31 = arith.addf %20, %30 : vector<8x128xf32>
    %32 = arith.select %23, %25, %31 : vector<8x128xi1>, vector<8x128xf32>
    %c1 = arith.constant 1 : index
    %c0_17 = arith.constant 0 : index
    %c0_18 = arith.constant 0 : index
    %33 = vector.load %arg2[%c1, %c0_17, %c0_18] : memref<4x128x128xf32, #tpu.memory_space<vmem>>, vector<1x128x128xf32>
    %34 = vector.shape_cast %33 : vector<1x128x128xf32> to vector<128x128xf32>
    %cst_19 = arith.constant dense<0.000000e+00> : vector<8x128xf32>
    %35 = tpu.matmul %32, %34, %cst_19 {dimension_numbers = #tpu.dot_dimension_numbers<[1], [0], [0], [1], [0, 0, 1, 1], [], []>} : vector<8x128xf32>, vector<128x128xf32>, vector<8x128xf32> -> vector<8x128xf32>
    %c1_20 = arith.constant 1 : index
    %c0_21 = arith.constant 0 : index
    %c0_22 = arith.constant 0 : index
    %36 = vector.load %arg4[%c1_20, %c0_21, %c0_22] : memref<4x1x128xf32, #tpu.memory_space<vmem>>, vector<1x1x128xf32>
    %37 = vector.shape_cast %36 : vector<1x1x128xf32> to vector<1x128xf32>
    %38 = vector.broadcast %37 : vector<1x128xf32> to vector<8x128xf32>
    %39 = arith.addf %35, %38 : vector<8x128xf32>
    %40 = arith.mulf %32, %32 : vector<8x128xf32>
    %c1_23 = arith.constant 1 : index
    %c0_24 = arith.constant 0 : index
    %c0_25 = arith.constant 0 : index
    %41 = vector.load %arg3[%c1_23, %c0_24, %c0_25] : memref<4x128x128xf32, #tpu.memory_space<vmem>>, vector<1x128x128xf32>
    %42 = vector.shape_cast %41 : vector<1x128x128xf32> to vector<128x128xf32>
    %cst_26 = arith.constant dense<0.000000e+00> : vector<8x128xf32>
    %43 = tpu.matmul %40, %42, %cst_26 {dimension_numbers = #tpu.dot_dimension_numbers<[1], [0], [0], [1], [0, 0, 1, 1], [], []>} : vector<8x128xf32>, vector<128x128xf32>, vector<8x128xf32> -> vector<8x128xf32>
    %cst_27 = arith.constant 9.99999993E-9 : f32
    %44 = vector.broadcast %cst_27 : f32 to vector<8x128xf32>
    %45 = arith.addf %43, %44 : vector<8x128xf32>
    %46 = math.sqrt %45 : vector<8x128xf32>
    %c1_28 = arith.constant 1 : index
    %c0_29 = arith.constant 0 : index
    %c0_30 = arith.constant 0 : index
    %47 = vector.load %arg5[%c1_28, %c0_29, %c0_30] : memref<4x8x128xf32, #tpu.memory_space<vmem>>, vector<1x8x128xf32>
    %48 = vector.shape_cast %47 : vector<1x8x128xf32> to vector<8x128xf32>
    %49 = arith.mulf %46, %48 : vector<8x128xf32>
    %50 = arith.addf %39, %49 : vector<8x128xf32>
    %cst_31 = arith.constant 0.000000e+00 : f32
    %51 = vector.broadcast %cst_31 : f32 to vector<8x128xf32>
    %52 = arith.maximumf %50, %51 : vector<8x128xf32>
    %53 = vector.broadcast %cst_31 : f32 to vector<8x128xf32>
    %54 = arith.subf %50, %53 : vector<8x128xf32>
    %55 = arith.cmpf one, %54, %54 : vector<8x128xf32>
    %56 = vector.broadcast %cst_31 : f32 to vector<8x128xf32>
    %57 = arith.addf %50, %56 : vector<8x128xf32>
    %58 = math.absf %54 : vector<8x128xf32>
    %cst_32 = arith.constant 0.000000e+00 : f32
    %59 = vector.broadcast %cst_32 : f32 to vector<8x128xf32>
    %60 = arith.subf %59, %58 : vector<8x128xf32>
    %61 = math.exp %60 : vector<8x128xf32>
    %62 = math.log1p %61 : vector<8x128xf32>
    %63 = arith.addf %52, %62 : vector<8x128xf32>
    %64 = arith.select %55, %57, %63 : vector<8x128xi1>, vector<8x128xf32>
    %c2 = arith.constant 2 : index
    %c0_33 = arith.constant 0 : index
    %c0_34 = arith.constant 0 : index
    %65 = vector.load %arg2[%c2, %c0_33, %c0_34] : memref<4x128x128xf32, #tpu.memory_space<vmem>>, vector<1x128x128xf32>
    %66 = vector.shape_cast %65 : vector<1x128x128xf32> to vector<128x128xf32>
    %cst_35 = arith.constant dense<0.000000e+00> : vector<8x128xf32>
    %67 = tpu.matmul %64, %66, %cst_35 {dimension_numbers = #tpu.dot_dimension_numbers<[1], [0], [0], [1], [0, 0, 1, 1], [], []>} : vector<8x128xf32>, vector<128x128xf32>, vector<8x128xf32> -> vector<8x128xf32>
    %c2_36 = arith.constant 2 : index
    %c0_37 = arith.constant 0 : index
    %c0_38 = arith.constant 0 : index
    %68 = vector.load %arg4[%c2_36, %c0_37, %c0_38] : memref<4x1x128xf32, #tpu.memory_space<vmem>>, vector<1x1x128xf32>
    %69 = vector.shape_cast %68 : vector<1x1x128xf32> to vector<1x128xf32>
    %70 = vector.broadcast %69 : vector<1x128xf32> to vector<8x128xf32>
    %71 = arith.addf %67, %70 : vector<8x128xf32>
    %72 = arith.mulf %64, %64 : vector<8x128xf32>
    %c2_39 = arith.constant 2 : index
    %c0_40 = arith.constant 0 : index
    %c0_41 = arith.constant 0 : index
    %73 = vector.load %arg3[%c2_39, %c0_40, %c0_41] : memref<4x128x128xf32, #tpu.memory_space<vmem>>, vector<1x128x128xf32>
    %74 = vector.shape_cast %73 : vector<1x128x128xf32> to vector<128x128xf32>
    %cst_42 = arith.constant dense<0.000000e+00> : vector<8x128xf32>
    %75 = tpu.matmul %72, %74, %cst_42 {dimension_numbers = #tpu.dot_dimension_numbers<[1], [0], [0], [1], [0, 0, 1, 1], [], []>} : vector<8x128xf32>, vector<128x128xf32>, vector<8x128xf32> -> vector<8x128xf32>
    %cst_43 = arith.constant 9.99999993E-9 : f32
    %76 = vector.broadcast %cst_43 : f32 to vector<8x128xf32>
    %77 = arith.addf %75, %76 : vector<8x128xf32>
    %78 = math.sqrt %77 : vector<8x128xf32>
    %c2_44 = arith.constant 2 : index
    %c0_45 = arith.constant 0 : index
    %c0_46 = arith.constant 0 : index
    %79 = vector.load %arg5[%c2_44, %c0_45, %c0_46] : memref<4x8x128xf32, #tpu.memory_space<vmem>>, vector<1x8x128xf32>
    %80 = vector.shape_cast %79 : vector<1x8x128xf32> to vector<8x128xf32>
    %81 = arith.mulf %78, %80 : vector<8x128xf32>
    %82 = arith.addf %71, %81 : vector<8x128xf32>
    %cst_47 = arith.constant 0.000000e+00 : f32
    %83 = vector.broadcast %cst_47 : f32 to vector<8x128xf32>
    %84 = arith.maximumf %82, %83 : vector<8x128xf32>
    %85 = vector.broadcast %cst_47 : f32 to vector<8x128xf32>
    %86 = arith.subf %82, %85 : vector<8x128xf32>
    %87 = arith.cmpf one, %86, %86 : vector<8x128xf32>
    %88 = vector.broadcast %cst_47 : f32 to vector<8x128xf32>
    %89 = arith.addf %82, %88 : vector<8x128xf32>
    %90 = math.absf %86 : vector<8x128xf32>
    %cst_48 = arith.constant 0.000000e+00 : f32
    %91 = vector.broadcast %cst_48 : f32 to vector<8x128xf32>
    %92 = arith.subf %91, %90 : vector<8x128xf32>
    %93 = math.exp %92 : vector<8x128xf32>
    %94 = math.log1p %93 : vector<8x128xf32>
    %95 = arith.addf %84, %94 : vector<8x128xf32>
    %96 = arith.select %87, %89, %95 : vector<8x128xi1>, vector<8x128xf32>
    %c3 = arith.constant 3 : index
    %c0_49 = arith.constant 0 : index
    %c0_50 = arith.constant 0 : index
    %97 = vector.load %arg2[%c3, %c0_49, %c0_50] : memref<4x128x128xf32, #tpu.memory_space<vmem>>, vector<1x128x128xf32>
    %98 = vector.shape_cast %97 : vector<1x128x128xf32> to vector<128x128xf32>
    %cst_51 = arith.constant dense<0.000000e+00> : vector<8x128xf32>
    %99 = tpu.matmul %96, %98, %cst_51 {dimension_numbers = #tpu.dot_dimension_numbers<[1], [0], [0], [1], [0, 0, 1, 1], [], []>} : vector<8x128xf32>, vector<128x128xf32>, vector<8x128xf32> -> vector<8x128xf32>
    %c3_52 = arith.constant 3 : index
    %c0_53 = arith.constant 0 : index
    %c0_54 = arith.constant 0 : index
    %100 = vector.load %arg4[%c3_52, %c0_53, %c0_54] : memref<4x1x128xf32, #tpu.memory_space<vmem>>, vector<1x1x128xf32>
    %101 = vector.shape_cast %100 : vector<1x1x128xf32> to vector<1x128xf32>
    %102 = vector.broadcast %101 : vector<1x128xf32> to vector<8x128xf32>
    %103 = arith.addf %99, %102 : vector<8x128xf32>
    %104 = arith.mulf %96, %96 : vector<8x128xf32>
    %c3_55 = arith.constant 3 : index
    %c0_56 = arith.constant 0 : index
    %c0_57 = arith.constant 0 : index
    %105 = vector.load %arg3[%c3_55, %c0_56, %c0_57] : memref<4x128x128xf32, #tpu.memory_space<vmem>>, vector<1x128x128xf32>
    %106 = vector.shape_cast %105 : vector<1x128x128xf32> to vector<128x128xf32>
    %cst_58 = arith.constant dense<0.000000e+00> : vector<8x128xf32>
    %107 = tpu.matmul %104, %106, %cst_58 {dimension_numbers = #tpu.dot_dimension_numbers<[1], [0], [0], [1], [0, 0, 1, 1], [], []>} : vector<8x128xf32>, vector<128x128xf32>, vector<8x128xf32> -> vector<8x128xf32>
    %cst_59 = arith.constant 9.99999993E-9 : f32
    %108 = vector.broadcast %cst_59 : f32 to vector<8x128xf32>
    %109 = arith.addf %107, %108 : vector<8x128xf32>
    %110 = math.sqrt %109 : vector<8x128xf32>
    %c3_60 = arith.constant 3 : index
    %c0_61 = arith.constant 0 : index
    %c0_62 = arith.constant 0 : index
    %111 = vector.load %arg5[%c3_60, %c0_61, %c0_62] : memref<4x8x128xf32, #tpu.memory_space<vmem>>, vector<1x8x128xf32>
    %112 = vector.shape_cast %111 : vector<1x8x128xf32> to vector<8x128xf32>
    %113 = arith.mulf %110, %112 : vector<8x128xf32>
    %114 = arith.addf %103, %113 : vector<8x128xf32>
    %c0_63 = arith.constant 0 : index
    %c0_64 = arith.constant 0 : index
    %115 = vector.load %arg6[%c0_63, %c0_64] : memref<8x128xf32, #tpu.memory_space<vmem>>, vector<8x128xf32>
    tpu.vector_store %arg6[%c0_63, %c0_64], %114 {strides = array<i32>} : memref<8x128xf32, #tpu.memory_space<vmem>>, vector<8x128xf32>,
    return
  }
  func.func @transform_0(%arg0: i32) -> (i32, i32) {
    %c0_i32 = arith.constant 0 : i32
    %c0_i32_0 = arith.constant 0 : i32
    return %arg0, %c0_i32 : i32, i32
  }
  func.func @transform_1(%arg0: i32) -> (i32, i32, i32) {
    %c0_i32 = arith.constant 0 : i32
    %c0_i32_0 = arith.constant 0 : i32
    %c0_i32_1 = arith.constant 0 : i32
    %c0_i32_2 = arith.constant 0 : i32
    return %c0_i32, %c0_i32_0, %c0_i32_1 : i32, i32, i32
  }
  func.func @transform_2(%arg0: i32) -> (i32, i32, i32) {
    %c0_i32 = arith.constant 0 : i32
    %c0_i32_0 = arith.constant 0 : i32
    %c0_i32_1 = arith.constant 0 : i32
    %c0_i32_2 = arith.constant 0 : i32
    return %c0_i32, %c0_i32_0, %c0_i32_1 : i32, i32, i32
  }
  func.func @transform_3(%arg0: i32) -> (i32, i32, i32) {
    %c0_i32 = arith.constant 0 : i32
    %c0_i32_0 = arith.constant 0 : i32
    %c0_i32_1 = arith.constant 0 : i32
    %c0_i32_2 = arith.constant 0 : i32
    return %c0_i32, %c0_i32_0, %c0_i32_1 : i32, i32, i32
  }
  func.func @transform_4(%arg0: i32) -> (i32, i32, i32) {
    %c0_i32 = arith.constant 0 : i32
    %c0_i32_0 = arith.constant 0 : i32
    %c0_i32_1 = arith.constant 0 : i32
    return %c0_i32, %arg0, %c0_i32_0 : i32, i32, i32
  }
  func.func @transform_5(%arg0: i32) -> (i32, i32) {
    %c0_i32 = arith.constant 0 : i32
    %c0_i32_0 = arith.constant 0 : i32
    return %arg0, %c0_i32 : i32, i32
  }
}

</mosaic_0001>

<bundles_post_ra>
// kernel: bnn_forward.1
= control target key start
LH: loop header
LB: loop body
LE: loop exit
PB: predicated region body
PF: predicated region fallthrough
CT: control target
= control target key end

     0   :  { %v1396_v0 = vmov 0.0   ;;  %vm1397_vm0 = vmmov 0   ;;  %s1986_s2 = inlined_call_operand.vmem [shape: f32[4,128,128], index: 2, kind: input, shape index: {}]   ;;  %s1987_s1 = inlined_call_operand.vmem [shape: f32[4,128,128], index: 1, kind: input, shape index: {}]   ;;  %s1988_s0 = inlined_call_operand.vmem [shape: f32[8,128], index: 0, kind: input, shape index: {}]   ;;  %s1989_s3 = inlined_call_operand.vmem [shape: f32[4,1,128], index: 3, kind: input, shape index: {}]   ;;  %s1990_s4 = inlined_call_operand.vmem [shape: f32[4,8,128], index: 4, kind: input, shape index: {}]   ;;  %s1991_s5 = inlined_call_operand.vmem [shape: f32[8,128], index: 5, kind: output, shape index: {}]  }
   0x1   :  { %1129 = vmatprep.subr.mxu1 %v1396_v0  ;;  %v130_v1 = vld [vmem:[%s1986_s2 + $0x78] sm:$0xff]  ;;  %v129_v2 = vld [vmem:[%s1986_s2 + $0x70] sm:$0xff]  ;;  %1094 = vmatprep.subr.mxu0 %v1396_v0  ;;  %v128_v3 = vld [vmem:[%s1986_s2 + $0x68] sm:$0xff] }
   0x2   :  { %1130 = vmatpush3.msra.mxu1 %v130_v1  ;;  %1161 = vmatprep.mubr.msk.f32.mxu1 %vm1397_vm0, %v1396_v0  ;;  %v36_v4 = vld [vmem:[%s1987_s1 + $0x78] sm:$0xff]  ;;  %v35_v5 = vld [vmem:[%s1987_s1 + $0x70] sm:$0xff]  ;;  %v127_v6 = vld [vmem:[%s1986_s2 + $0x60] sm:$0xff] }
   0x3   :  { %1131 = vmatprep.subr.mxu1 %v1396_v0  ;;  %1126 = vmatprep.mubr.msk.f32.mxu0 %vm1397_vm0, %v1396_v0  ;;  %v34_v7 = vld [vmem:[%s1987_s1 + $0x68] sm:$0xff]  ;;  %v126_v8 = vld [vmem:[%s1986_s2 + $0x58] sm:$0xff]  ;;  %v33_v9 = vld [vmem:[%s1987_s1 + $0x60] sm:$0xff] }
   0x4   :  { %1132 = vmatpush3.msra.mxu1 %v129_v2  ;;  %1095 = vmatpush3.msra.mxu0 %v36_v4  ;;  %v125_v10 = vld [vmem:[%s1986_s2 + $0x50] sm:$0xff]  ;;  %v32_v11 = vld [vmem:[%s1987_s1 + $0x58] sm:$0xff]  ;;  %v124_v12 = vld [vmem:[%s1986_s2 + $0x48] sm:$0xff] }
   0x5   :  { %1133 = vmatprep.subr.mxu1 %v1396_v0  ;;  %1096 = vmatprep.subr.mxu0 %v1396_v0  ;;  %v31_v13 = vld [vmem:[%s1987_s1 + $0x50] sm:$0xff]  ;;  %v123_v14 = vld [vmem:[%s1986_s2 + $0x40] sm:$0xff]  ;;  %v30_v15 = vld [vmem:[%s1987_s1 + $0x48] sm:$0xff] }
   0x6   :  { %1134 = vmatpush3.msra.mxu1 %v128_v3  ;;  %1097 = vmatpush3.msra.mxu0 %v35_v5  ;;  %v122_v16 = vld [vmem:[%s1986_s2 + $0x38] sm:$0xff]  ;;  %v29_v17 = vld [vmem:[%s1987_s1 + $0x40] sm:$0xff]  ;;  %v121_v18 = vld [vmem:[%s1986_s2 + $0x30] sm:$0xff] }
   0x7   :  { %1135 = vmatprep.subr.mxu1 %v1396_v0  ;;  %1098 = vmatprep.subr.mxu0 %v1396_v0  ;;  %v28_v19 = vld [vmem:[%s1987_s1 + $0x38] sm:$0xff]  ;;  %v120_v20 = vld [vmem:[%s1986_s2 + $0x28] sm:$0xff]  ;;  %v27_v21 = vld [vmem:[%s1987_s1 + $0x30] sm:$0xff] }
   0x8   :  { %1136 = vmatpush3.msra.mxu1 %v127_v6  ;;  %1099 = vmatpush3.msra.mxu0 %v34_v7  ;;  %v119_v22 = vld [vmem:[%s1986_s2 + $0x20] sm:$0xff]  ;;  %v26_v23 = vld [vmem:[%s1987_s1 + $0x28] sm:$0xff]  ;;  %v118_v24 = vld [vmem:[%s1986_s2 + $0x18] sm:$0xff] }
   0x9   :  { %1137 = vmatprep.subr.mxu1 %v1396_v0  ;;  %1100 = vmatprep.subr.mxu0 %v1396_v0  ;;  %v25_v25 = vld [vmem:[%s1987_s1 + $0x20] sm:$0xff]  ;;  %v117_v26 = vld [vmem:[%s1986_s2 + $0x10] sm:$0xff]  ;;  %v24_v28 = vld [vmem:[%s1987_s1 + $0x18] sm:$0xff] }
   0xa   :  { %1138 = vmatpush3.msra.mxu1 %v126_v8  ;;  %1101 = vmatpush3.msra.mxu0 %v33_v9  ;;  %v20_v27 = vld [vmem:[%s1988_s0] sm:$0xff]  ;;  %v116_v29 = vld [vmem:[%s1986_s2 + $0x8] sm:$0xff]  ;;  %v23_v30 = vld [vmem:[%s1987_s1 + $0x10] sm:$0xff] }
   0xb   :  { %1139 = vmatprep.subr.mxu1 %v1396_v0  ;;  %1102 = vmatprep.subr.mxu0 %v1396_v0  ;;  %v115_v31 = vld [vmem:[%s1986_s2] sm:$0xff]  ;;  %v114_v32 = vmul.f32 %v20_v27, %v20_v27  ;;  %v22_v33 = vld [vmem:[%s1987_s1 + $0x8] sm:$0xff]  ;;  %v868_v35 = vld [vmem:[%s1987_s1 + $0xf8] sm:$0xff] }
   0xc   :  { %1140 = vmatpush3.msra.mxu1 %v125_v10  ;;  %1103 = vmatpush3.msra.mxu0 %v32_v11  ;;  %v21_v34 = vld [vmem:[%s1987_s1] sm:$0xff]  ;;  %v867_v36 = vld [vmem:[%s1987_s1 + $0xf0] sm:$0xff]  ;;  %v886_v37 = vld [vmem:[%s1986_s2 + $0xf8] sm:$0xff] }
   0xd   :  { %1141 = vmatprep.subr.mxu1 %v1396_v0  ;;  %1104 = vmatprep.subr.mxu0 %v1396_v0  ;;  %v885_v38 = vld [vmem:[%s1986_s2 + $0xf0] sm:$0xff]  ;;  %v866_v39 = vld [vmem:[%s1987_s1 + $0xe8] sm:$0xff]  ;;  %v865_v41 = vld [vmem:[%s1987_s1 + $0xe0] sm:$0xff] }
   0xe   :  { %1142 = vmatpush3.msra.mxu1 %v124_v12  ;;  %1105 = vmatpush3.msra.mxu0 %v31_v13  ;;  %v884_v40 = vld [vmem:[%s1986_s2 + $0xe8] sm:$0xff]  ;;  %v883_v42 = vld [vmem:[%s1986_s2 + $0xe0] sm:$0xff]  ;;  %v864_v43 = vld [vmem:[%s1987_s1 + $0xd8] sm:$0xff] }
   0xf   :  { %1143 = vmatprep.subr.mxu1 %v1396_v0  ;;  %1106 = vmatprep.subr.mxu0 %v1396_v0  ;;  %v882_v44 = vld [vmem:[%s1986_s2 + $0xd8] sm:$0xff]  ;;  %v863_v45 = vld [vmem:[%s1987_s1 + $0xd0] sm:$0xff]  ;;  %v862_v47 = vld [vmem:[%s1987_s1 + $0xc8] sm:$0xff] }
  0x10   :  { %1144 = vmatpush3.msra.mxu1 %v123_v14  ;;  %1107 = vmatpush3.msra.mxu0 %v30_v15  ;;  %v881_v46 = vld [vmem:[%s1986_s2 + $0xd0] sm:$0xff]  ;;  %v880_v48 = vld [vmem:[%s1986_s2 + $0xc8] sm:$0xff]  ;;  %v861_v49 = vld [vmem:[%s1987_s1 + $0xc0] sm:$0xff] }
  0x11   :  { %1145 = vmatprep.subr.mxu1 %v1396_v0  ;;  %1108 = vmatprep.subr.mxu0 %v1396_v0  ;;  %v879_v50 = vld [vmem:[%s1986_s2 + $0xc0] sm:$0xff]  ;;  %v860_v51 = vld [vmem:[%s1987_s1 + $0xb8] sm:$0xff]  ;;  %v859_v53 = vld [vmem:[%s1987_s1 + $0xb0] sm:$0xff] }
  0x12   :  { %1146 = vmatpush3.msra.mxu1 %v122_v16  ;;  %1109 = vmatpush3.msra.mxu0 %v29_v17  ;;  %v878_v52 = vld [vmem:[%s1986_s2 + $0xb8] sm:$0xff]  ;;  %v877_v54 = vld [vmem:[%s1986_s2 + $0xb0] sm:$0xff]  ;;  %v858_v55 = vld [vmem:[%s1987_s1 + $0xa8] sm:$0xff] }
  0x13   :  { %1147 = vmatprep.subr.mxu1 %v1396_v0  ;;  %1110 = vmatprep.subr.mxu0 %v1396_v0  ;;  %v876_v56 = vld [vmem:[%s1986_s2 + $0xa8] sm:$0xff]  ;;  %v857_v57 = vld [vmem:[%s1987_s1 + $0xa0] sm:$0xff]  ;;  %v856_v59 = vld [vmem:[%s1987_s1 + $0x98] sm:$0xff] }
  0x14   :  { %1148 = vmatpush3.msra.mxu1 %v121_v18  ;;  %1111 = vmatpush3.msra.mxu0 %v28_v19  ;;  %v875_v58 = vld [vmem:[%s1986_s2 + $0xa0] sm:$0xff]  ;;  %v874_v60 = vld [vmem:[%s1986_s2 + $0x98] sm:$0xff]  ;;  %v855_v61 = vld [vmem:[%s1987_s1 + $0x90] sm:$0xff] }
  0x15   :  { %1149 = vmatprep.subr.mxu1 %v1396_v0  ;;  %1112 = vmatprep.subr.mxu0 %v1396_v0  ;;  %v873_v62 = vld [vmem:[%s1986_s2 + $0x90] sm:$0xff]  ;;  %v854_v63 = vld [vmem:[%s1987_s1 + $0x88] sm:$0xff]  ;;  %v853_v2 = vld [vmem:[%s1987_s1 + $0x80] sm:$0xff] }
  0x16   :  { %1150 = vmatpush3.msra.mxu1 %v120_v20  ;;  %1113 = vmatpush3.msra.mxu0 %v27_v21  ;;  %v872_v1 = vld [vmem:[%s1986_s2 + $0x88] sm:$0xff]  ;;  %v871_v3 = vld [vmem:[%s1986_s2 + $0x80] sm:$0xff] }
  0x17   :  { %1151 = vmatprep.subr.mxu1 %v1396_v0  ;;  %1114 = vmatprep.subr.mxu0 %v1396_v0  ;;  %v852_v10 = vld [vmem:[%s1989_s3] ss:$0 sm:$0xff] }
  0x18   :  { %1152 = vmatpush3.msra.mxu1 %v119_v22  ;;  %1115 = vmatpush3.msra.mxu0 %v26_v23  ;;  %v208_v13 = vld [vmem:[%s1990_s4] sm:$0xff] }
  0x19   :  { %1153 = vmatprep.subr.mxu1 %v1396_v0  ;;  %1116 = vmatprep.subr.mxu0 %v1396_v0 }
  0x1a   :  { %1154 = vmatpush3.msra.mxu1 %v118_v24  ;;  %1117 = vmatpush3.msra.mxu0 %v25_v25 }
  0x1b   :  { %1155 = vmatprep.subr.mxu1 %v1396_v0  ;;  %1118 = vmatprep.subr.mxu0 %v1396_v0 }
  0x1c   :  { %1156 = vmatpush3.msra.mxu1 %v117_v26  ;;  %1119 = vmatpush3.msra.mxu0 %v24_v28 }
  0x1d   :  { %1157 = vmatprep.subr.mxu1 %v1396_v0  ;;  %1120 = vmatprep.subr.mxu0 %v1396_v0 }
  0x1e   :  { %1158 = vmatpush3.msra.mxu1 %v116_v29  ;;  %1121 = vmatpush3.msra.mxu0 %v23_v30 }
  0x1f   :  { %1159 = vmatprep.subr.mxu1 %v1396_v0  ;;  %1122 = vmatprep.subr.mxu0 %v1396_v0 }
  0x20   :  { %1160 = vmatpush3.msra.mxu1 %v115_v31  ;;  %1123 = vmatpush3.msra.mxu0 %v22_v33 }
  0x21   :  { %1162 = vmatmul.mubr.f32.vlgmr.msra.gmra.mxu1 %v114_v32  ;;  %1124 = vmatprep.subr.mxu0 %v1396_v0 }
  0x22   :  { %1199 = vmatprep.subr.mxu1 %v1396_v0  ;;  %1125 = vmatpush3.msra.mxu0 %v21_v34 }
  0x23   :  { %1231 = vmatprep.mubr.msk.f32.mxu1 %vm1397_vm0, %v1396_v0  ;;  %1127 = vmatmul.mubr.f32.vlgmr.msra.gmra.mxu0 %v20_v27 }
  0x24   :  { %1164 = vmatprep.subr.mxu0 %v1396_v0  ;;  %1196 = vmatprep.mubr.msk.f32.mxu0 %vm1397_vm0, %v1396_v0 }
  0x25   :  { %1165 = vmatpush3.msra.mxu0 %v868_v35  ;;  %1200 = vmatpush3.msra.mxu1 %v886_v37  ;;  %v903_v35 = vld [vmem:[%s1987_s1 + $0x178] sm:$0xff] }
  0x26   :  { %1166 = vmatprep.subr.mxu0 %v1396_v0  ;;  %1201 = vmatprep.subr.mxu1 %v1396_v0  ;;  %v921_v37 = vld [vmem:[%s1986_s2 + $0x178] sm:$0xff] }
  0x27   :  { %1167 = vmatpush3.msra.mxu0 %v867_v36  ;;  %1202 = vmatpush3.msra.mxu1 %v885_v38  ;;  %v902_v36 = vld [vmem:[%s1987_s1 + $0x170] sm:$0xff] }
  0x28   :  { %1168 = vmatprep.subr.mxu0 %v1396_v0  ;;  %1203 = vmatprep.subr.mxu1 %v1396_v0  ;;  %v920_v38 = vld [vmem:[%s1986_s2 + $0x170] sm:$0xff] }
  0x29   :  { %1169 = vmatpush3.msra.mxu0 %v866_v39  ;;  %1204 = vmatpush3.msra.mxu1 %v884_v40  ;;  %v901_v39 = vld [vmem:[%s1987_s1 + $0x168] sm:$0xff] }
  0x2a   :  { %1170 = vmatprep.subr.mxu0 %v1396_v0  ;;  %1205 = vmatprep.subr.mxu1 %v1396_v0  ;;  %v919_v40 = vld [vmem:[%s1986_s2 + $0x168] sm:$0xff] }
  0x2b   :  { %1171 = vmatpush3.msra.mxu0 %v865_v41  ;;  %1206 = vmatpush3.msra.mxu1 %v883_v42  ;;  %v900_v41 = vld [vmem:[%s1987_s1 + $0x160] sm:$0xff] }
  0x2c   :  { %1172 = vmatprep.subr.mxu0 %v1396_v0  ;;  %1207 = vmatprep.subr.mxu1 %v1396_v0  ;;  %v918_v42 = vld [vmem:[%s1986_s2 + $0x160] sm:$0xff] }
  0x2d   :  { %1173 = vmatpush3.msra.mxu0 %v864_v43  ;;  %1208 = vmatpush3.msra.mxu1 %v882_v44  ;;  %v899_v43 = vld [vmem:[%s1987_s1 + $0x158] sm:$0xff] }
  0x2e   :  { %1174 = vmatprep.subr.mxu0 %v1396_v0  ;;  %1209 = vmatprep.subr.mxu1 %v1396_v0  ;;  %v917_v44 = vld [vmem:[%s1986_s2 + $0x158] sm:$0xff] }
  0x2f   :  { %1175 = vmatpush3.msra.mxu0 %v863_v45  ;;  %1210 = vmatpush3.msra.mxu1 %v881_v46  ;;  %v898_v45 = vld [vmem:[%s1987_s1 + $0x150] sm:$0xff] }
  0x30   :  { %1176 = vmatprep.subr.mxu0 %v1396_v0  ;;  %1211 = vmatprep.subr.mxu1 %v1396_v0  ;;  %v916_v46 = vld [vmem:[%s1986_s2 + $0x150] sm:$0xff] }
  0x31   :  { %1177 = vmatpush3.msra.mxu0 %v862_v47  ;;  %1212 = vmatpush3.msra.mxu1 %v880_v48  ;;  %v897_v47 = vld [vmem:[%s1987_s1 + $0x148] sm:$0xff] }
  0x32   :  { %1178 = vmatprep.subr.mxu0 %v1396_v0  ;;  %1213 = vmatprep.subr.mxu1 %v1396_v0  ;;  %v915_v48 = vld [vmem:[%s1986_s2 + $0x148] sm:$0xff] }
  0x33   :  { %1179 = vmatpush3.msra.mxu0 %v861_v49  ;;  %1214 = vmatpush3.msra.mxu1 %v879_v50  ;;  %v896_v49 = vld [vmem:[%s1987_s1 + $0x140] sm:$0xff] }
  0x34   :  { %1180 = vmatprep.subr.mxu0 %v1396_v0  ;;  %1215 = vmatprep.subr.mxu1 %v1396_v0  ;;  %v914_v50 = vld [vmem:[%s1986_s2 + $0x140] sm:$0xff] }
  0x35   :  { %1181 = vmatpush3.msra.mxu0 %v860_v51  ;;  %1216 = vmatpush3.msra.mxu1 %v878_v52  ;;  %v895_v51 = vld [vmem:[%s1987_s1 + $0x138] sm:$0xff] }
  0x36   :  { %1182 = vmatprep.subr.mxu0 %v1396_v0  ;;  %1217 = vmatprep.subr.mxu1 %v1396_v0  ;;  %v913_v52 = vld [vmem:[%s1986_s2 + $0x138] sm:$0xff] }
  0x37   :  { %1183 = vmatpush3.msra.mxu0 %v859_v53  ;;  %1218 = vmatpush3.msra.mxu1 %v877_v54  ;;  %v894_v53 = vld [vmem:[%s1987_s1 + $0x130] sm:$0xff] }
  0x38   :  { %1184 = vmatprep.subr.mxu0 %v1396_v0  ;;  %1219 = vmatprep.subr.mxu1 %v1396_v0  ;;  %v912_v54 = vld [vmem:[%s1986_s2 + $0x130] sm:$0xff] }
  0x39   :  { %1185 = vmatpush3.msra.mxu0 %v858_v55  ;;  %1220 = vmatpush3.msra.mxu1 %v876_v56  ;;  %v893_v55 = vld [vmem:[%s1987_s1 + $0x128] sm:$0xff] }
  0x3a   :  { %1186 = vmatprep.subr.mxu0 %v1396_v0  ;;  %1221 = vmatprep.subr.mxu1 %v1396_v0  ;;  %v911_v56 = vld [vmem:[%s1986_s2 + $0x128] sm:$0xff] }
  0x3b   :  { %1187 = vmatpush3.msra.mxu0 %v857_v57  ;;  %1222 = vmatpush3.msra.mxu1 %v875_v58  ;;  %v892_v57 = vld [vmem:[%s1987_s1 + $0x120] sm:$0xff] }
  0x3c   :  { %1188 = vmatprep.subr.mxu0 %v1396_v0  ;;  %1223 = vmatprep.subr.mxu1 %v1396_v0  ;;  %v910_v58 = vld [vmem:[%s1986_s2 + $0x120] sm:$0xff] }
  0x3d   :  { %1189 = vmatpush3.msra.mxu0 %v856_v59  ;;  %1224 = vmatpush3.msra.mxu1 %v874_v60  ;;  %v891_v59 = vld [vmem:[%s1987_s1 + $0x118] sm:$0xff] }
  0x3e   :  { %1190 = vmatprep.subr.mxu0 %v1396_v0  ;;  %1225 = vmatprep.subr.mxu1 %v1396_v0  ;;  %v909_v60 = vld [vmem:[%s1986_s2 + $0x118] sm:$0xff] }
  0x3f   :  { %1191 = vmatpush3.msra.mxu0 %v855_v61  ;;  %1226 = vmatpush3.msra.mxu1 %v873_v62  ;;  %v890_v61 = vld [vmem:[%s1987_s1 + $0x110] sm:$0xff] }
  0x40   :  { %1192 = vmatprep.subr.mxu0 %v1396_v0  ;;  %1227 = vmatprep.subr.mxu1 %v1396_v0  ;;  %v908_v62 = vld [vmem:[%s1986_s2 + $0x110] sm:$0xff] }
  0x41   :  { %1193 = vmatpush3.msra.mxu0 %v854_v63  ;;  %1228 = vmatpush3.msra.mxu1 %v872_v1  ;;  %v889_v63 = vld [vmem:[%s1987_s1 + $0x108] sm:$0xff] }
  0x42   :  { %1194 = vmatprep.subr.mxu0 %v1396_v0  ;;  %1229 = vmatprep.subr.mxu1 %v1396_v0  ;;  %v907_v1 = vld [vmem:[%s1986_s2 + $0x108] sm:$0xff] }
  0x43   :  { %1195 = vmatpush3.msra.mxu0 %v853_v2  ;;  %1230 = vmatpush3.msra.mxu1 %v871_v3  ;;  %v888_v2 = vld [vmem:[%s1987_s1 + $0x100] sm:$0xff] }
  0x44   :  { %1234 = vmatprep.subr.mxu0 %v1396_v0  ;;  %1269 = vmatprep.subr.mxu1 %v1396_v0  ;;  %v906_v3 = vld [vmem:[%s1986_s2 + $0x100] sm:$0xff] }
  0xe1   :  { %v197_v4 = vpop.f32.mrf.mxu1 }
  0xe2   :  { %v198_v5 = vadd.f32 1e-08, %v197_v4 }
  0xe3   :  { %v1163_v6 = vpop.f32.mrf.mxu1  ;;  %v110_v7 = vpop.f32.mrf.mxu0 }
  0xe4   :  { %1376 = vrsqrt.f32 %v198_v5  ;;  %vm203_vm1 = vcmp.eq.f32.partialorder %v198_v5, inf  ;;  %v206_v12 = vand.u32 2147483648, %v198_v5  ;;  %v111_v14 = vadd.f32 %v852_v10, %v110_v7 }
  0xe5   :  { %v1128_v8 = vpop.f32.mrf.mxu0  ;;  %vm205_vm2 = vcmp.eq.f32.partialorder %v198_v5, 0.0 }
  0xf1   :  { %v1377_v9 = vpop.eup %1376 }
  0xf2   :  { %v202_v11 = vmul.f32 %v1377_v9, %v198_v5 }
  0xf4   :  { %v204_v15 = vsel %vm203_vm1, %v198_v5, %v202_v11  ;;  %v887_v11 = vld [vmem:[%s1990_s4 + $0x8] sm:$0xff] }
  0xf5   :  { %v207_v16 = vsel %vm205_vm2, %v206_v12, %v204_v15  ;;  %v870_v12 = vld [vmem:[%s1989_s3 + $0x1] ss:$0 sm:$0xff] }
  0xf6   :  { %v209_v17 = vmul.f32 %v208_v13, %v207_v16 }
  0xf8   :  { %v210_v18 = vadd.f32 %v209_v17, %v111_v14 }
  0xfa   :  { %v214_v19 = vand.u32 2147483647, %v210_v18  ;;  %v211_v30 = vmax.f32 %v210_v18, 0.0  ;;  %vm212_vm4 = vcmp.ne.f32.partialorder %v210_v18, %v210_v18 }
  0xfc   :  { %v215_v20 = vsub.f32 0.0, %v214_v19 }
  0xfe   :  { %v216_v21 = vmul.f32 1.442695, %v215_v20 }
 0x100   :  { %1378 = vpow2.f32 %v216_v21 }
 0x10d   :  { %v1379_v22 = vpop.eup %1378 }
 0x10e   :  { %v218_v23 = vadd.f32 1.0, %v1379_v22  ;;  %v221_v24 = vmul.f32 -0.5, %v1379_v22  ;;  %v224_v26 = vand.u32 2147483647, %v1379_v22 }
 0x110   :  { %1380 = vlog2.f32 %v218_v23  ;;  %v222_v25 = vadd.f32 1.0, %v221_v24  ;;  %vm225_vm3 = vcmp.lt.f32.partialorder %v224_v26, 0.0004427343 }
 0x112   :  { %v223_v29 = vmul.f32 %v1379_v22, %v222_v25 }
 0x11d   :  { %v1381_v27 = vpop.eup %1380 }
 0x11e   :  { %v220_v28 = vmul.f32 0.6931472, %v1381_v27 }
 0x120   :  { %v226_v31 = vsel %vm225_vm3, %v223_v29, %v220_v28 }
 0x121   :  { %v227_v32 = vadd.f32 %v226_v31, %v211_v30 }
 0x123   :  { %v228_v33 = vsel %vm212_vm4, %v210_v18, %v227_v32 }
 0x124   :  { %1197 = vmatmul.mubr.f32.vlgmr.msra.gmra.mxu0 %v228_v33  ;;  %v324_v34 = vmul.f32 %v228_v33, %v228_v33 }
 0x125   :  { %1266 = vmatprep.mubr.msk.f32.mxu0 %vm1397_vm0, %v1396_v0  ;;  %1235 = vmatpush3.msra.mxu0 %v903_v35  ;;  %v938_v35 = vld [vmem:[%s1987_s1 + $0x1f8] sm:$0xff] }
 0x126   :  { %1232 = vmatmul.mubr.f32.vlgmr.msra.gmra.mxu1 %v324_v34  ;;  %1236 = vmatprep.subr.mxu0 %v1396_v0 }
 0x127   :  { %1301 = vmatprep.mubr.msk.f32.mxu1 %vm1397_vm0, %v1396_v0  ;;  %1270 = vmatpush3.msra.mxu1 %v921_v37  ;;  %v956_v37 = vld [vmem:[%s1986_s2 + $0x1f8] sm:$0xff] }
 0x128   :  { %1271 = vmatprep.subr.mxu1 %v1396_v0  ;;  %1237 = vmatpush3.msra.mxu0 %v902_v36  ;;  %v937_v36 = vld [vmem:[%s1987_s1 + $0x1f0] sm:$0xff] }
 0x129   :  { %1272 = vmatpush3.msra.mxu1 %v920_v38  ;;  %1238 = vmatprep.subr.mxu0 %v1396_v0  ;;  %v955_v38 = vld [vmem:[%s1986_s2 + $0x1f0] sm:$0xff] }
 0x12a   :  { %1273 = vmatprep.subr.mxu1 %v1396_v0  ;;  %1239 = vmatpush3.msra.mxu0 %v901_v39  ;;  %v936_v39 = vld [vmem:[%s1987_s1 + $0x1e8] sm:$0xff] }
 0x12b   :  { %1274 = vmatpush3.msra.mxu1 %v919_v40  ;;  %1240 = vmatprep.subr.mxu0 %v1396_v0  ;;  %v954_v40 = vld [vmem:[%s1986_s2 + $0x1e8] sm:$0xff] }
 0x12c   :  { %1275 = vmatprep.subr.mxu1 %v1396_v0  ;;  %1241 = vmatpush3.msra.mxu0 %v900_v41  ;;  %v935_v41 = vld [vmem:[%s1987_s1 + $0x1e0] sm:$0xff] }
 0x12d   :  { %1276 = vmatpush3.msra.mxu1 %v918_v42  ;;  %1242 = vmatprep.subr.mxu0 %v1396_v0  ;;  %v953_v42 = vld [vmem:[%s1986_s2 + $0x1e0] sm:$0xff] }
 0x12e   :  { %1277 = vmatprep.subr.mxu1 %v1396_v0  ;;  %1243 = vmatpush3.msra.mxu0 %v899_v43  ;;  %v934_v43 = vld [vmem:[%s1987_s1 + $0x1d8] sm:$0xff] }
 0x12f   :  { %1278 = vmatpush3.msra.mxu1 %v917_v44  ;;  %1244 = vmatprep.subr.mxu0 %v1396_v0  ;;  %v952_v44 = vld [vmem:[%s1986_s2 + $0x1d8] sm:$0xff] }
 0x130   :  { %1279 = vmatprep.subr.mxu1 %v1396_v0  ;;  %1245 = vmatpush3.msra.mxu0 %v898_v45  ;;  %v933_v45 = vld [vmem:[%s1987_s1 + $0x1d0] sm:$0xff] }
 0x131   :  { %1280 = vmatpush3.msra.mxu1 %v916_v46  ;;  %1246 = vmatprep.subr.mxu0 %v1396_v0  ;;  %v951_v46 = vld [vmem:[%s1986_s2 + $0x1d0] sm:$0xff] }
 0x132   :  { %1281 = vmatprep.subr.mxu1 %v1396_v0  ;;  %1247 = vmatpush3.msra.mxu0 %v897_v47  ;;  %v932_v47 = vld [vmem:[%s1987_s1 + $0x1c8] sm:$0xff] }
 0x133   :  { %1282 = vmatpush3.msra.mxu1 %v915_v48  ;;  %1248 = vmatprep.subr.mxu0 %v1396_v0  ;;  %v950_v48 = vld [vmem:[%s1986_s2 + $0x1c8] sm:$0xff] }
 0x134   :  { %1283 = vmatprep.subr.mxu1 %v1396_v0  ;;  %1249 = vmatpush3.msra.mxu0 %v896_v49  ;;  %v931_v49 = vld [vmem:[%s1987_s1 + $0x1c0] sm:$0xff] }
 0x135   :  { %1284 = vmatpush3.msra.mxu1 %v914_v50  ;;  %1250 = vmatprep.subr.mxu0 %v1396_v0  ;;  %v949_v50 = vld [vmem:[%s1986_s2 + $0x1c0] sm:$0xff] }
 0x136   :  { %1285 = vmatprep.subr.mxu1 %v1396_v0  ;;  %1251 = vmatpush3.msra.mxu0 %v895_v51  ;;  %v930_v51 = vld [vmem:[%s1987_s1 + $0x1b8] sm:$0xff] }
 0x137   :  { %1286 = vmatpush3.msra.mxu1 %v913_v52  ;;  %1252 = vmatprep.subr.mxu0 %v1396_v0  ;;  %v948_v52 = vld [vmem:[%s1986_s2 + $0x1b8] sm:$0xff] }
 0x138   :  { %1287 = vmatprep.subr.mxu1 %v1396_v0  ;;  %1253 = vmatpush3.msra.mxu0 %v894_v53  ;;  %v929_v53 = vld [vmem:[%s1987_s1 + $0x1b0] sm:$0xff] }
 0x139   :  { %1288 = vmatpush3.msra.mxu1 %v912_v54  ;;  %1254 = vmatprep.subr.mxu0 %v1396_v0  ;;  %v947_v54 = vld [vmem:[%s1986_s2 + $0x1b0] sm:$0xff] }
 0x13a   :  { %1289 = vmatprep.subr.mxu1 %v1396_v0  ;;  %1255 = vmatpush3.msra.mxu0 %v893_v55  ;;  %v928_v55 = vld [vmem:[%s1987_s1 + $0x1a8] sm:$0xff] }
 0x13b   :  { %1290 = vmatpush3.msra.mxu1 %v911_v56  ;;  %1256 = vmatprep.subr.mxu0 %v1396_v0  ;;  %v946_v56 = vld [vmem:[%s1986_s2 + $0x1a8] sm:$0xff] }
 0x13c   :  { %1291 = vmatprep.subr.mxu1 %v1396_v0  ;;  %1257 = vmatpush3.msra.mxu0 %v892_v57  ;;  %v927_v57 = vld [vmem:[%s1987_s1 + $0x1a0] sm:$0xff] }
 0x13d   :  { %1292 = vmatpush3.msra.mxu1 %v910_v58  ;;  %1258 = vmatprep.subr.mxu0 %v1396_v0  ;;  %v945_v58 = vld [vmem:[%s1986_s2 + $0x1a0] sm:$0xff] }
 0x13e   :  { %1293 = vmatprep.subr.mxu1 %v1396_v0  ;;  %1259 = vmatpush3.msra.mxu0 %v891_v59  ;;  %v926_v59 = vld [vmem:[%s1987_s1 + $0x198] sm:$0xff] }
 0x13f   :  { %1294 = vmatpush3.msra.mxu1 %v909_v60  ;;  %1260 = vmatprep.subr.mxu0 %v1396_v0  ;;  %v944_v60 = vld [vmem:[%s1986_s2 + $0x198] sm:$0xff] }
 0x140   :  { %1295 = vmatprep.subr.mxu1 %v1396_v0  ;;  %1261 = vmatpush3.msra.mxu0 %v890_v61  ;;  %v925_v61 = vld [vmem:[%s1987_s1 + $0x190] sm:$0xff] }
 0x141   :  { %1296 = vmatpush3.msra.mxu1 %v908_v62  ;;  %1262 = vmatprep.subr.mxu0 %v1396_v0  ;;  %v943_v62 = vld [vmem:[%s1986_s2 + $0x190] sm:$0xff] }
 0x142   :  { %1297 = vmatprep.subr.mxu1 %v1396_v0  ;;  %1263 = vmatpush3.msra.mxu0 %v889_v63  ;;  %v924_v63 = vld [vmem:[%s1987_s1 + $0x188] sm:$0xff] }
 0x143   :  { %1298 = vmatpush3.msra.mxu1 %v907_v1  ;;  %1264 = vmatprep.subr.mxu0 %v1396_v0  ;;  %v942_v1 = vld [vmem:[%s1986_s2 + $0x188] sm:$0xff] }
 0x144   :  { %1299 = vmatprep.subr.mxu1 %v1396_v0  ;;  %1265 = vmatpush3.msra.mxu0 %v888_v2  ;;  %v923_v2 = vld [vmem:[%s1987_s1 + $0x180] sm:$0xff] }
 0x145   :  { %1304 = vmatprep.subr.mxu0 %v1396_v0  ;;  %1300 = vmatpush3.msra.mxu1 %v906_v3  ;;  %v941_v3 = vld [vmem:[%s1986_s2 + $0x180] sm:$0xff] }
 0x146   :  { %1339 = vmatprep.subr.mxu1 %v1396_v0 }
 0x1e4   :  { %v320_v4 = vpop.f32.mrf.mxu0 }
 0x1e5   :  { %v321_v16 = vadd.f32 %v870_v12, %v320_v4 }
 0x1e6   :  { %v1198_v5 = vpop.f32.mrf.mxu0  ;;  %v408_v6 = vpop.f32.mrf.mxu1 }
 0x1e7   :  { %v409_v7 = vadd.f32 1e-08, %v408_v6 }
 0x1e8   :  { %v1233_v8 = vpop.f32.mrf.mxu1 }
 0x1e9   :  { %1382 = vrsqrt.f32 %v409_v7  ;;  %vm414_vm5 = vcmp.eq.f32.partialorder %v409_v7, inf  ;;  %v417_v13 = vand.u32 2147483648, %v409_v7  ;;  %vm416_vm6 = vcmp.eq.f32.partialorder %v409_v7, 0.0 }
 0x1f6   :  { %v1383_v9 = vpop.eup %1382 }
 0x1f7   :  { %v413_v10 = vmul.f32 %v1383_v9, %v409_v7 }
 0x1f9   :  { %v415_v14 = vsel %vm414_vm5, %v409_v7, %v413_v10 }
 0x1fa   :  { %v418_v15 = vsel %vm416_vm6, %v417_v13, %v415_v14 }
 0x1fb   :  { %v421_v17 = vmul.f32 %v887_v11, %v418_v15  ;;  %v922_v11 = vld [vmem:[%s1990_s4 + $0x10] sm:$0xff] }
 0x1fd   :  { %v422_v18 = vadd.f32 %v421_v17, %v321_v16 }
 0x1ff   :  { %v426_v19 = vand.u32 2147483647, %v422_v18  ;;  %v423_v30 = vmax.f32 %v422_v18, 0.0  ;;  %vm424_vm8 = vcmp.ne.f32.partialorder %v422_v18, %v422_v18 }
 0x201   :  { %v427_v20 = vsub.f32 0.0, %v426_v19 }
 0x203   :  { %v428_v21 = vmul.f32 1.442695, %v427_v20 }
 0x205   :  { %1384 = vpow2.f32 %v428_v21 }
 0x212   :  { %v1385_v22 = vpop.eup %1384 }
 0x213   :  { %v430_v23 = vadd.f32 1.0, %v1385_v22  ;;  %v433_v24 = vmul.f32 -0.5, %v1385_v22  ;;  %v436_v26 = vand.u32 2147483647, %v1385_v22 }
 0x215   :  { %1386 = vlog2.f32 %v430_v23  ;;  %v434_v25 = vadd.f32 1.0, %v433_v24  ;;  %vm437_vm7 = vcmp.lt.f32.partialorder %v436_v26, 0.0004427343 }
 0x217   :  { %v435_v29 = vmul.f32 %v1385_v22, %v434_v25 }
 0x222   :  { %v1387_v27 = vpop.eup %1386 }
 0x223   :  { %v432_v28 = vmul.f32 0.6931472, %v1387_v27 }
 0x225   :  { %v438_v31 = vsel %vm437_vm7, %v435_v29, %v432_v28 }
 0x226   :  { %v439_v32 = vadd.f32 %v438_v31, %v423_v30 }
 0x228   :  { %v440_v33 = vsel %vm424_vm8, %v422_v18, %v439_v32 }
 0x229   :  { %1267 = vmatmul.mubr.f32.vlgmr.msra.gmra.mxu0 %v440_v33  ;;  %v536_v34 = vmul.f32 %v440_v33, %v440_v33 }
 0x22a   :  { %1336 = vmatprep.mubr.msk.f32.mxu0 %vm1397_vm0, %v1396_v0  ;;  %1305 = vmatpush3.msra.mxu0 %v938_v35 }
 0x22b   :  { %1302 = vmatmul.mubr.f32.vlgmr.msra.gmra.mxu1 %v536_v34  ;;  %1306 = vmatprep.subr.mxu0 %v1396_v0 }
 0x22c   :  { %1371 = vmatprep.mubr.msk.f32.mxu1 %vm1397_vm0, %v1396_v0  ;;  %1340 = vmatpush3.msra.mxu1 %v956_v37 }
 0x22d   :  { %1341 = vmatprep.subr.mxu1 %v1396_v0  ;;  %1307 = vmatpush3.msra.mxu0 %v937_v36 }
 0x22e   :  { %1342 = vmatpush3.msra.mxu1 %v955_v38  ;;  %1308 = vmatprep.subr.mxu0 %v1396_v0 }
 0x22f   :  { %1343 = vmatprep.subr.mxu1 %v1396_v0  ;;  %1309 = vmatpush3.msra.mxu0 %v936_v39 }
 0x230   :  { %1344 = vmatpush3.msra.mxu1 %v954_v40  ;;  %1310 = vmatprep.subr.mxu0 %v1396_v0 }
 0x231   :  { %1345 = vmatprep.subr.mxu1 %v1396_v0  ;;  %1311 = vmatpush3.msra.mxu0 %v935_v41  ;;  %v957_v41 = vld [vmem:[%s1990_s4 + $0x18] sm:$0xff] }
 0x232   :  { %1346 = vmatpush3.msra.mxu1 %v953_v42  ;;  %1312 = vmatprep.subr.mxu0 %v1396_v0  ;;  %v940_v42 = vld [vmem:[%s1989_s3 + $0x3] ss:$0 sm:$0xff] }
 0x233   :  { %1347 = vmatprep.subr.mxu1 %v1396_v0  ;;  %1313 = vmatpush3.msra.mxu0 %v934_v43 }
 0x234   :  { %1348 = vmatpush3.msra.mxu1 %v952_v44  ;;  %1314 = vmatprep.subr.mxu0 %v1396_v0 }
 0x235   :  { %1349 = vmatprep.subr.mxu1 %v1396_v0  ;;  %1315 = vmatpush3.msra.mxu0 %v933_v45 }
 0x236   :  { %1350 = vmatpush3.msra.mxu1 %v951_v46  ;;  %1316 = vmatprep.subr.mxu0 %v1396_v0 }
 0x237   :  { %1351 = vmatprep.subr.mxu1 %v1396_v0  ;;  %1317 = vmatpush3.msra.mxu0 %v932_v47 }
 0x238   :  { %1352 = vmatpush3.msra.mxu1 %v950_v48  ;;  %1318 = vmatprep.subr.mxu0 %v1396_v0 }
 0x239   :  { %1353 = vmatprep.subr.mxu1 %v1396_v0  ;;  %1319 = vmatpush3.msra.mxu0 %v931_v49 }
 0x23a   :  { %1354 = vmatpush3.msra.mxu1 %v949_v50  ;;  %1320 = vmatprep.subr.mxu0 %v1396_v0 }
 0x23b   :  { %1355 = vmatprep.subr.mxu1 %v1396_v0  ;;  %1321 = vmatpush3.msra.mxu0 %v930_v51 }
 0x23c   :  { %1356 = vmatpush3.msra.mxu1 %v948_v52  ;;  %1322 = vmatprep.subr.mxu0 %v1396_v0 }
 0x23d   :  { %1357 = vmatprep.subr.mxu1 %v1396_v0  ;;  %1323 = vmatpush3.msra.mxu0 %v929_v53 }
 0x23e   :  { %1358 = vmatpush3.msra.mxu1 %v947_v54  ;;  %1324 = vmatprep.subr.mxu0 %v1396_v0 }
 0x23f   :  { %1359 = vmatprep.subr.mxu1 %v1396_v0  ;;  %1325 = vmatpush3.msra.mxu0 %v928_v55 }
 0x240   :  { %1360 = vmatpush3.msra.mxu1 %v946_v56  ;;  %1326 = vmatprep.subr.mxu0 %v1396_v0 }
 0x241   :  { %1361 = vmatprep.subr.mxu1 %v1396_v0  ;;  %1327 = vmatpush3.msra.mxu0 %v927_v57 }
 0x242   :  { %1362 = vmatpush3.msra.mxu1 %v945_v58  ;;  %1328 = vmatprep.subr.mxu0 %v1396_v0 }
 0x243   :  { %1363 = vmatprep.subr.mxu1 %v1396_v0  ;;  %1329 = vmatpush3.msra.mxu0 %v926_v59 }
 0x244   :  { %1364 = vmatpush3.msra.mxu1 %v944_v60  ;;  %1330 = vmatprep.subr.mxu0 %v1396_v0 }
 0x245   :  { %1365 = vmatprep.subr.mxu1 %v1396_v0  ;;  %1331 = vmatpush3.msra.mxu0 %v925_v61 }
 0x246   :  { %1366 = vmatpush3.msra.mxu1 %v943_v62  ;;  %1332 = vmatprep.subr.mxu0 %v1396_v0 }
 0x247   :  { %1367 = vmatprep.subr.mxu1 %v1396_v0  ;;  %1333 = vmatpush3.msra.mxu0 %v924_v63 }
 0x248   :  { %1368 = vmatpush3.msra.mxu1 %v942_v1  ;;  %1334 = vmatprep.subr.mxu0 %v1396_v0 }
 0x249   :  { %1369 = vmatprep.subr.mxu1 %v1396_v0  ;;  %1335 = vmatpush3.msra.mxu0 %v923_v2  ;;  %v905_v0 = vld [vmem:[%s1989_s3 + $0x2] ss:$0 sm:$0xff] }
 0x24a   :  { %1370 = vmatpush3.msra.mxu1 %v941_v3 }
 0x2e9   :  { %v532_v4 = vpop.f32.mrf.mxu0 }
 0x2ea   :  { %v533_v15 = vadd.f32 %v905_v0, %v532_v4 }
 0x2eb   :  { %v1268_v5 = vpop.f32.mrf.mxu0  ;;  %v620_v6 = vpop.f32.mrf.mxu1 }
 0x2ec   :  { %v621_v7 = vadd.f32 1e-08, %v620_v6 }
 0x2ed   :  { %v1303_v8 = vpop.f32.mrf.mxu1 }
 0x2ee   :  { %1388 = vrsqrt.f32 %v621_v7  ;;  %vm626_vm9 = vcmp.eq.f32.partialorder %v621_v7, inf  ;;  %v629_v12 = vand.u32 2147483648, %v621_v7  ;;  %vm628_vm10 = vcmp.eq.f32.partialorder %v621_v7, 0.0 }
 0x2fb   :  { %v1389_v9 = vpop.eup %1388 }
 0x2fc   :  { %v625_v10 = vmul.f32 %v1389_v9, %v621_v7 }
 0x2fe   :  { %v627_v13 = vsel %vm626_vm9, %v621_v7, %v625_v10 }
 0x2ff   :  { %v630_v14 = vsel %vm628_vm10, %v629_v12, %v627_v13 }
 0x300   :  { %v633_v16 = vmul.f32 %v922_v11, %v630_v14 }
 0x302   :  { %v634_v17 = vadd.f32 %v633_v16, %v533_v15 }
 0x304   :  { %v638_v18 = vand.u32 2147483647, %v634_v17  ;;  %v635_v29 = vmax.f32 %v634_v17, 0.0  ;;  %vm636_vm12 = vcmp.ne.f32.partialorder %v634_v17, %v634_v17 }
 0x306   :  { %v639_v19 = vsub.f32 0.0, %v638_v18 }
 0x308   :  { %v640_v20 = vmul.f32 1.442695, %v639_v19 }
 0x30a   :  { %1390 = vpow2.f32 %v640_v20 }
 0x317   :  { %v1391_v21 = vpop.eup %1390 }
 0x318   :  { %v642_v22 = vadd.f32 1.0, %v1391_v21  ;;  %v645_v23 = vmul.f32 -0.5, %v1391_v21  ;;  %v648_v25 = vand.u32 2147483647, %v1391_v21 }
 0x31a   :  { %1392 = vlog2.f32 %v642_v22  ;;  %v646_v24 = vadd.f32 1.0, %v645_v23  ;;  %vm649_vm11 = vcmp.lt.f32.partialorder %v648_v25, 0.0004427343 }
 0x31c   :  { %v647_v28 = vmul.f32 %v1391_v21, %v646_v24 }
 0x327   :  { %v1393_v26 = vpop.eup %1392 }
 0x328   :  { %v644_v27 = vmul.f32 0.6931472, %v1393_v26 }
 0x32a   :  { %v650_v30 = vsel %vm649_vm11, %v647_v28, %v644_v27 }
 0x32b   :  { %v651_v31 = vadd.f32 %v650_v30, %v635_v29 }
 0x32d   :  { %v652_v32 = vsel %vm636_vm12, %v634_v17, %v651_v31 }
 0x32e   :  { %1337 = vmatmul.mubr.f32.vlgmr.msra.gmra.mxu0 %v652_v32  ;;  %v748_v33 = vmul.f32 %v652_v32, %v652_v32 }
 0x330   :  { %1372 = vmatmul.mubr.f32.vlgmr.msra.gmra.mxu1 %v748_v33 }
 0x3ee   :  { %v744_v34 = vpop.f32.mrf.mxu0 }
 0x3ef   :  { %v745_v46 = vadd.f32 %v940_v42, %v744_v34 }
 0x3f0   :  { %v1338_v35 = vpop.f32.mrf.mxu0  ;;  %v832_v36 = vpop.f32.mrf.mxu1 }
 0x3f1   :  { %v833_v37 = vadd.f32 1e-08, %v832_v36 }
 0x3f2   :  { %v1373_v38 = vpop.f32.mrf.mxu1 }
 0x3f3   :  { %1394 = vrsqrt.f32 %v833_v37  ;;  %vm838_vm13 = vcmp.eq.f32.partialorder %v833_v37, inf  ;;  %v841_v43 = vand.u32 2147483648, %v833_v37  ;;  %vm840_vm14 = vcmp.eq.f32.partialorder %v833_v37, 0.0 }
 0x400   :  { %v1395_v39 = vpop.eup %1394 }
 0x401   :  { %v837_v40 = vmul.f32 %v1395_v39, %v833_v37 }
 0x403   :  { %v839_v44 = vsel %vm838_vm13, %v833_v37, %v837_v40 }
 0x404   :  { %v842_v45 = vsel %vm840_vm14, %v841_v43, %v839_v44 }
 0x405   :  { %v845_v47 = vmul.f32 %v957_v41, %v842_v45 }
 0x407   :  { %v846_v48 = vadd.f32 %v845_v47, %v745_v46 }
 0x409   :  { %847 = vst [vmem:[%s1991_s5] sm:$0xff] %v846_v48 }

</bundles_post_ra>
